<compile_context>
chip_gen: v7x
topology: tpu7x:2x2x1
jax: 0.10.0
libtpu: 0.0.40
codegen_flags: <defaults>
</compile_context>

<pallas_src>
import functools

import jax
import jax.numpy as jnp
from jax import lax
from jax.experimental import pallas as pl
from jax.experimental.pallas import tpu as pltpu


def _physical_vmem_bytes():
    """Best-effort physical VMEM query; conservative (v7x-safe) fallback."""
    try:
        info = pltpu.get_tpu_info()
        return int(getattr(info, "vmem_capacity_bytes", 64 * 1024 * 1024))
    except Exception:
        return 64 * 1024 * 1024


def _loss_tile_kernel(pred_ref, true_ref, out_ref, *, rows_total, tile_rows,
                      needs_mask):
    # pred_ref / true_ref: (tile_rows, lanes) blocks in their native dtype.
    # out_ref: (1, 4, lanes) per-tile, per-lane partial sums (f32).
    x = pred_ref[...].astype(jnp.float32)
    t = true_ref[...].astype(jnp.float32)

    if needs_mask:
        # Mask rows past the true extent.  Replace inputs (not outputs) so any
        # garbage in the out-of-bounds block region (possibly NaN/Inf) never
        # enters the math: pred=-1e4 -> exp underflows to 0 -> bce term = 0
        # and sigmoid = 0; true=0 -> all four partial quantities are exactly 0.
        row0 = pl.program_id(0) * tile_rows
        local_row = lax.broadcasted_iota(jnp.int32, x.shape, 0)
        valid = (row0 + local_row) < rows_total
        x = jnp.where(valid, x, jnp.float32(-1e4))
        t = jnp.where(valid, t, jnp.float32(0.0))

    e = jnp.exp(-jnp.abs(x))                              # single EUP exp / element
    # BCEWithLogits (numerically stable): max(x,0) - x*t + log1p(exp(-|x|))
    bce = jnp.maximum(x, 0.0) - x * t + jnp.log1p(e)
    # Stable sigmoid reusing e: approx reciprocal (EUP) + one Newton step (VPU)
    # keeps ~1e-7 relative error without the multi-op exact divide.
    denom = 1.0 + e
    r0 = pl.reciprocal(denom, approx=True)
    r = r0 * (2.0 - denom * r0)
    s = jnp.where(x >= 0.0, r, e * r)

    # Sublane-axis partial sums only; cross-lane reduce + channel split
    # (lane parity) are finished in JAX on the tiny (num_tiles, 4, lanes) output.
    out_ref[0, 0:1, :] = jnp.sum(bce, axis=0, keepdims=True)
    out_ref[0, 1:2, :] = jnp.sum(s * t, axis=0, keepdims=True)
    out_ref[0, 2:3, :] = jnp.sum(s, axis=0, keepdims=True)
    out_ref[0, 3:4, :] = jnp.sum(t, axis=0, keepdims=True)


def combined_loss(y_pred, y_true):
    B, H, W, C = y_pred.shape
    assert C == 2, "expected last dim = 2 (region, affinity)"
    lanes = W * C
    # Lane-parity == channel trick requires an even lane width.
    assert lanes % 2 == 0, "lane width (W*C) must be even for the channel split"

    rows = B * H
    n_per_channel = B * H * W

    # Free views of the contiguous NHWC buffers: no pad, no wrapper dtype cast.
    pred2d = y_pred.reshape(rows, lanes)
    true2d = y_true.reshape(rows, lanes)

    # ---- VMEM-aware, megacore-friendly tiling (all static Python ints). ----
    big_vmem = _physical_vmem_bytes() >= 96 * 1024 * 1024   # v5e/v6e: 128 MiB
    max_block_elems = (1024 if big_vmem else 512) * 1024     # ~4 MiB / ~2 MiB f32
    tile_rows_cap = max(8, (max_block_elems // lanes) // 8 * 8)

    if rows <= 8:
        tile_rows = rows                      # single full-extent block
    else:
        tile_rows = min(tile_rows_cap, 8 * pl.cdiv(rows, 8))
        # Ensure >= 2 tiles when possible so the parallel axis splits across
        # both v7x TensorCores instead of leaving one idle.
        if pl.cdiv(rows, tile_rows) == 1 and tile_rows >= 16:
            tile_rows = 8 * pl.cdiv(pl.cdiv(rows, 2), 8)

    num_tiles = pl.cdiv(rows, tile_rows)
    needs_mask = (rows % tile_rows) != 0

    kernel = functools.partial(
        _loss_tile_kernel,
        rows_total=rows,
        tile_rows=tile_rows,
        needs_mask=needs_mask,
    )

    n_elems = rows * lanes
    cost = pl.CostEstimate(
        flops=14 * n_elems,
        transcendentals=3 * n_elems,
        bytes_accessed=(y_pred.dtype.itemsize + y_true.dtype.itemsize) * n_elems
        + 4 * 4 * lanes * num_tiles,
    )

    partial_sums = pl.pallas_call(
        kernel,
        out_shape=jax.ShapeDtypeStruct((num_tiles, 4, lanes), jnp.float32),
        grid_spec=pltpu.PrefetchScalarGridSpec(
            num_scalar_prefetch=0,
            grid=(num_tiles,),
            in_specs=[
                pl.BlockSpec((tile_rows, lanes), lambda i: (i, 0)),
                pl.BlockSpec((tile_rows, lanes), lambda i: (i, 0)),
            ],
            out_specs=pl.BlockSpec((1, 4, lanes), lambda i: (i, 0, 0)),
        ),
        compiler_params=pltpu.CompilerParams(
            # No cross-step state (each tile owns its output block): fully
            # parallel, megacore-shardable.
            dimension_semantics=("parallel",),
            vmem_limit_bytes=(64 if big_vmem else 40) * 1024 * 1024,
        ),
        cost_estimate=cost,
    )(pred2d, true2d)

    # Tiny final reduction in JAX: sum over tiles, split channels by lane
    # parity (C=2 is innermost -> lane % 2 == channel), then sum over lanes.
    per_lane = jnp.sum(partial_sums, axis=0)                   # (4, lanes)
    ch_sums = jnp.stack(
        [jnp.sum(per_lane[:, 0::2], axis=1),                   # channel 0: region
         jnp.sum(per_lane[:, 1::2], axis=1)],                  # channel 1: affinity
        axis=0)                                                # (2, 4)

    n = jnp.float32(n_per_channel)
    smooth = jnp.float32(1.0)
    bce_mean = ch_sums[:, 0] / n
    dice = 1.0 - (2.0 * ch_sums[:, 1] + smooth) / (ch_sums[:, 2] + ch_sums[:, 3] + smooth)

    # total = (region_bce + region_dice) + (affinity_bce + affinity_dice)
    return jnp.sum(bce_mean + dice)


def _reference_loss(y_pred, y_true):
    # Pure-JAX reference mirroring the PyTorch module exactly.
    def bce_with_logits(x, t):
        return jnp.mean(jnp.maximum(x, 0.0) - x * t + jnp.log1p(jnp.exp(-jnp.abs(x))))

    def dice(x, t):
        s = jax.nn.sigmoid(x)
        inter = jnp.sum(s * t)
        return 1.0 - (2.0 * inter + 1.0) / (jnp.sum(s) + jnp.sum(t) + 1.0)

    rp, ap = y_pred[..., 0], y_pred[..., 1]
    rt, at = y_true[..., 0], y_true[..., 1]
    return (bce_with_logits(rp, rt) + dice(rp, rt)
            + bce_with_logits(ap, at) + dice(ap, at))


if __name__ == "__main__":
    key = jax.random.PRNGKey(0)
    k1, k2 = jax.random.split(key)
    B, H, W = 2, 16, 16
    y_pred = jax.random.normal(k1, (B, H, W, 2), dtype=jnp.float32)
    y_true = (jax.random.uniform(k2, (B, H, W, 2)) > 0.5).astype(jnp.float32)

    loss = combined_loss(y_pred, y_true)
    jax.block_until_ready(loss)

    ref = _reference_loss(y_pred, y_true)
    assert jnp.allclose(loss, ref, rtol=1e-5, atol=1e-5), (loss, ref)

    print("KERNEL_OK")
</pallas_src>

<mosaic_0001>
module attributes {stable_mosaic.version = 11 : i64} {
  func.func @_loss_tile_kernel(%arg0: i32, %arg1: memref<16x32xf32, #tpu.memory_space<vmem>>, %arg2: memref<16x32xf32, #tpu.memory_space<vmem>>, %arg3: memref<1x4x32xf32, #tpu.memory_space<vmem>>) attributes {dimension_semantics = [#tpu.dimension_semantics<parallel>], iteration_bounds = array<i64: 2>, scalar_prefetch = 0 : i64, scratch_operands = 0 : i64, tpu.core_type = #tpu.core_type<tc>, window_params = [{transform_indices = @transform_0, window_bounds = array<i64: 16, 32>}, {transform_indices = @transform_1, window_bounds = array<i64: 16, 32>}, {transform_indices = @transform_2, window_bounds = array<i64: 1, 4, 32>}]} {
    %c0 = arith.constant 0 : index
    %c0_0 = arith.constant 0 : index
    %0 = vector.load %arg1[%c0, %c0_0] : memref<16x32xf32, #tpu.memory_space<vmem>>, vector<16x32xf32>
    %c0_1 = arith.constant 0 : index
    %c0_2 = arith.constant 0 : index
    %1 = vector.load %arg2[%c0_1, %c0_2] : memref<16x32xf32, #tpu.memory_space<vmem>>, vector<16x32xf32>
    %2 = math.absf %0 : vector<16x32xf32>
    %cst = arith.constant 0.000000e+00 : f32
    %3 = vector.broadcast %cst : f32 to vector<16x32xf32>
    %4 = arith.subf %3, %2 : vector<16x32xf32>
    %5 = math.exp %4 : vector<16x32xf32>
    %cst_3 = arith.constant 0.000000e+00 : f32
    %6 = vector.broadcast %cst_3 : f32 to vector<16x32xf32>
    %7 = arith.maximumf %0, %6 : vector<16x32xf32>
    %8 = arith.mulf %0, %1 : vector<16x32xf32>
    %9 = arith.subf %7, %8 : vector<16x32xf32>
    %10 = math.log1p %5 : vector<16x32xf32>
    %11 = arith.addf %9, %10 : vector<16x32xf32>
    %cst_4 = arith.constant 1.000000e+00 : f32
    %12 = vector.broadcast %cst_4 : f32 to vector<16x32xf32>
    %13 = arith.addf %12, %5 : vector<16x32xf32>
    %14 = tpu.reciprocal %13 {approx = true} : vector<16x32xf32> -> vector<16x32xf32>
    %15 = arith.mulf %13, %14 : vector<16x32xf32>
    %cst_5 = arith.constant 2.000000e+00 : f32
    %16 = vector.broadcast %cst_5 : f32 to vector<16x32xf32>
    %17 = arith.subf %16, %15 : vector<16x32xf32>
    %18 = arith.mulf %14, %17 : vector<16x32xf32>
    %cst_6 = arith.constant 0.000000e+00 : f32
    %19 = vector.broadcast %cst_6 : f32 to vector<16x32xf32>
    %20 = arith.cmpf oge, %0, %19 : vector<16x32xf32>
    %21 = arith.mulf %5, %18 : vector<16x32xf32>
    %22 = arith.select %20, %18, %21 : vector<16x32xi1>, vector<16x32xf32>
    %cst_7 = arith.constant dense<0.000000e+00> : vector<32xf32>
    %23 = vector.multi_reduction <add>, %11, %cst_7 [0] : vector<16x32xf32> to vector<32xf32>
    %24 = vector.shape_cast %23 : vector<32xf32> to vector<1x32xf32>
    %c0_8 = arith.constant 0 : index
    %c0_9 = arith.constant 0 : index
    %c0_10 = arith.constant 0 : index
    %25 = vector.load %arg3[%c0_8, %c0_9, %c0_10] : memref<1x4x32xf32, #tpu.memory_space<vmem>>, vector<1x1x32xf32>
    %26 = vector.shape_cast %25 : vector<1x1x32xf32> to vector<1x32xf32>
    %27 = vector.shape_cast %24 : vector<1x32xf32> to vector<1x1x32xf32>
    tpu.vector_store %arg3[%c0_8, %c0_9, %c0_10], %27 {strides = array<i32>} : memref<1x4x32xf32, #tpu.memory_space<vmem>>, vector<1x1x32xf32>,
    %28 = arith.mulf %22, %1 : vector<16x32xf32>
    %cst_11 = arith.constant dense<0.000000e+00> : vector<32xf32>
    %29 = vector.multi_reduction <add>, %28, %cst_11 [0] : vector<16x32xf32> to vector<32xf32>
    %30 = vector.shape_cast %29 : vector<32xf32> to vector<1x32xf32>
    %c0_12 = arith.constant 0 : index
    %c1 = arith.constant 1 : index
    %c0_13 = arith.constant 0 : index
    %31 = vector.load %arg3[%c0_12, %c1, %c0_13] : memref<1x4x32xf32, #tpu.memory_space<vmem>>, vector<1x1x32xf32>
    %32 = vector.shape_cast %31 : vector<1x1x32xf32> to vector<1x32xf32>
    %33 = vector.shape_cast %30 : vector<1x32xf32> to vector<1x1x32xf32>
    tpu.vector_store %arg3[%c0_12, %c1, %c0_13], %33 {strides = array<i32>} : memref<1x4x32xf32, #tpu.memory_space<vmem>>, vector<1x1x32xf32>,
    %cst_14 = arith.constant dense<0.000000e+00> : vector<32xf32>
    %34 = vector.multi_reduction <add>, %22, %cst_14 [0] : vector<16x32xf32> to vector<32xf32>
    %35 = vector.shape_cast %34 : vector<32xf32> to vector<1x32xf32>
    %c0_15 = arith.constant 0 : index
    %c2 = arith.constant 2 : index
    %c0_16 = arith.constant 0 : index
    %36 = vector.load %arg3[%c0_15, %c2, %c0_16] : memref<1x4x32xf32, #tpu.memory_space<vmem>>, vector<1x1x32xf32>
    %37 = vector.shape_cast %36 : vector<1x1x32xf32> to vector<1x32xf32>
    %38 = vector.shape_cast %35 : vector<1x32xf32> to vector<1x1x32xf32>
    tpu.vector_store %arg3[%c0_15, %c2, %c0_16], %38 {strides = array<i32>} : memref<1x4x32xf32, #tpu.memory_space<vmem>>, vector<1x1x32xf32>,
    %cst_17 = arith.constant dense<0.000000e+00> : vector<32xf32>
    %39 = vector.multi_reduction <add>, %1, %cst_17 [0] : vector<16x32xf32> to vector<32xf32>
    %40 = vector.shape_cast %39 : vector<32xf32> to vector<1x32xf32>
    %c0_18 = arith.constant 0 : index
    %c3 = arith.constant 3 : index
    %c0_19 = arith.constant 0 : index
    %41 = vector.load %arg3[%c0_18, %c3, %c0_19] : memref<1x4x32xf32, #tpu.memory_space<vmem>>, vector<1x1x32xf32>
    %42 = vector.shape_cast %41 : vector<1x1x32xf32> to vector<1x32xf32>
    %43 = vector.shape_cast %40 : vector<1x32xf32> to vector<1x1x32xf32>
    tpu.vector_store %arg3[%c0_18, %c3, %c0_19], %43 {strides = array<i32>} : memref<1x4x32xf32, #tpu.memory_space<vmem>>, vector<1x1x32xf32>,
    return
  }
  func.func @transform_0(%arg0: i32) -> (i32, i32) {
    %c0_i32 = arith.constant 0 : i32
    %c0_i32_0 = arith.constant 0 : i32
    return %arg0, %c0_i32 : i32, i32
  }
  func.func @transform_1(%arg0: i32) -> (i32, i32) {
    %c0_i32 = arith.constant 0 : i32
    %c0_i32_0 = arith.constant 0 : i32
    return %arg0, %c0_i32 : i32, i32
  }
  func.func @transform_2(%arg0: i32) -> (i32, i32, i32) {
    %c0_i32 = arith.constant 0 : i32
    %c0_i32_0 = arith.constant 0 : i32
    %c0_i32_1 = arith.constant 0 : i32
    return %arg0, %c0_i32, %c0_i32_0 : i32, i32, i32
  }
}

</mosaic_0001>

<bundles_post_ra>
// kernel: tpu_custom_call.1
= control target key start
LH: loop header
LB: loop body
LE: loop exit
PB: predicated region body
PF: predicated region fallthrough
CT: control target
= control target key end

     0   :  { %7 = vsyncpa [#allocation3], 0  ;;  %s908_s0 = inlined_call_operand.hbm [shape: f32[32,32], index: 0, kind: input, shape index: {}]   ;;  %s909_s1 = inlined_call_operand.hbm [shape: f32[32,32], index: 1, kind: input, shape index: {}]   ;;  %s910_s2 = inlined_call_operand.hbm [shape: f32[2,4,32], index: 2, kind: output, shape index: {}]  }
   0x1   :  { %9 = vsyncpa [#allocation3 + $0x1], 0 }
   0x2   :  { %10 = vsyncpa [#allocation6], 0 }
   0x3   :  { %12 = vsyncpa [#allocation6 + $0x1], 0 }
   0x4   :  { %13 = vsyncpa [#allocation4], 0 }
   0x5   :  { %15 = vsyncpa [#allocation4 + $0x1], 0  ;;  %s645_s9 = smov 0   ;;  %s647_s10 = smov 0  }
   0x6   :  { %s649_s11 = smov 0   ;;  %s651_s12 = smov 0  }
   0x7 LB: > { %s666_s13 = sadd.s32 4294967295, %s623_s12   ;;  %s409_s14 = sadd.s32 4294967294, %s623_s12   ;;  %s623_s12 = sphi %s651_s12, %s926_s12   ;;  %s619_s11 = sphi %s649_s11, %s925_s11   ;;  %s615_s10 = sphi %s647_s10, %s924_s10   ;;  %s611_s9 = sphi %s645_s9, %s923_s9  }
   0x8   : > { %s670_s15 = sadd.s32 1, %s623_s12   ;;  %s28_s16 = sadd.s32 1, %s619_s11 }
   0x9   : > { %s25_s17 = ssub.s32 %s623_s12, %s670_s15  ;;  %p35_p0 = scmp.ne.s32.totalorder %s619_s11, %s615_s10 }
   0xa   : > { %p26_p1 = scmp.eq.s32.totalorder %s25_s17, 0  ;;  %p36_p2 = scmp.eq.s32.totalorder %s623_s12, 0 }
   0xb   : > { %p41_p3 = scmp.ne.s32.totalorder %s615_s10, %s611_s9  ;;  %p42_p4 = scmp.eq.s32.totalorder %s666_s13, 0 }
   0xc   : > { %s682_s18 = scalar_select %p26_p1, %s619_s11, %s28_s16  }
   0xd   : > { %p684_p5 = por %p36_p2, %p35_p0  ;;  %p688_p6 = por %p42_p4, %p41_p3 }
   0xe   : > { %p91_p7 = scmp.eq.s32.totalorder %s666_s13, 1  ;;  %p97_p8 = scmp.eq.s32.totalorder %s409_s14, 1 }
   0xf   : > { %s914_s20 = scalar_select %p688_p6, 1, 0 }
  0x10   : > { %p445_p10 = scmp.lt.s32.totalorder %s623_s12, 2  ;;  %p695_p11 = por %p91_p7, %p35_p0 }
  0x11   : > { %p699_p12 = por %p97_p8, %p41_p3  ;;  %s704_s23 = sand.u32 1, %s619_s11  }
  0x12   : > { %s915_s21 = scalar_select %p695_p11, 1, 0 }
  0x13   : > { %s916_s22 = scalar_select %p699_p12, 1, 0 }
  0x14   : > { %s426_s24 = sshll.u32 %s623_s12, 8  ;;  %s412_s25 = sshll.u32 %s704_s23, 4 }
  0x15   : > { %s713_s28 = scalar_lea.hbm %s908_s0, %s426_s24  ;;  %s121_s29 = scalar_lea.vmem [#allocation2], %s412_s25 }
  0x16   : > { %s128_s30 = sshll.u32 %s121_s29, 4  ;;  %p719_p13 = pnand %p445_p10, %p684_p5  ;;  %s723_s30 = int_to_ptr.vmem [resolvable:$true] %s128_s30 }
  0x17   : > { %s118_s4 = scalar_lea.sflag [#allocation3], %s704_s23  ;;  %s493_s5 = scalar_lea.hbm %s713_s28, 256 }
  0x18   : > { %p494_p0 = scmp.ne.s32.totalorder %s713_s28, %s493_s5  ;;  %p495_p1 = pneg %p719_p13 }
  0x19   : > { %s498_s8 = scalar_lea.hbm %s908_s0, 512  ;;  %p499_p4 = scmp.lt.u32.totalorder %s713_s28, %s908_s0 }
  0x1a   : > { %p496_p2 = pnand %p495_p1, %p494_p0  ;;  %p500_p5 = scmp.lt.u32.totalorder %s498_s8, %s493_s5 }
  0x1b   : > { %p502_p8 = scmp.lt.u32.totalorder %s493_s5, %s713_s28 }
  0x1c   : > { %p497_p3 = pneg %p496_p2  ;;  %p501_p7 = por %p500_p5, %p499_p4 }
  0x1e   : > { %p503_p10 = por %p502_p8, %p501_p7 }
  0x20   : > { %p504_p9 = pnand %p503_p10, %p497_p3 }
  0x22   : > { %507 = shalt.err (!%p504_p9)
}
  0x23   : > { %s508_s17 = scalar_lea.vmem %s723_s30, 256  ;;  %s625_s19 = smov [#allocation2]  }
  0x24   : > { %p509_p0 = scmp.ne.s32.totalorder %s723_s30, %s508_s17  ;;  %s513_s26 = sshll.u32 %s625_s19, 4  ;;  %s514_s26 = int_to_ptr.vmem [resolvable:$false] %s513_s26 }
  0x25   : > { %s515_s27 = scalar_lea.vmem %s514_s26, 512  ;;  %p516_p11 = scmp.lt.s32.totalorder %s723_s30, %s514_s26 }
  0x26   : > { %p511_p2 = pnand %p509_p0, %p495_p1  ;;  %p517_p4 = scmp.lt.s32.totalorder %s515_s27, %s508_s17 }
  0x28   : > { %p512_p12 = pneg %p511_p2  ;;  %p518_p5 = por %p517_p4, %p516_p11 }
  0x2a   : > { %p519_p7 = pnand %p518_p5, %p512_p12 }
  0x2c   : > { %522 = shalt.err (!%p519_p7)
}
  0x2d   : > { %s626_s29 = smov 128   ;;  %s627_s5 = smov 8  }
  0x2e   : > { %437 = dma.hbm_to_vmem [thread:$0]  (!%p719_p13), %s713_s28, 256, %s723_s30, %s118_s4, %s626_s29, %s626_s29, %s627_s5  }
  0x2f   : > { %p418_p9 = scmp.ge.s32.totalorder %s623_s12, 1  ;;  %p157_p11 = scmp.lt.s32.totalorder %s623_s12, 3 }
  0x30   : > { %s767_s14 = scalar_lea.hbm %s909_s1, %s426_s24  ;;  %s142_s16 = scalar_lea.vmem [#allocation5], %s412_s25 }
  0x31   : > { %p758_p12 = pnand %p418_p9, %p157_p11  ;;  %s149_s17 = sshll.u32 %s142_s16, 4  ;;  %s771_s17 = int_to_ptr.vmem [resolvable:$true] %s149_s17 }
  0x32   : > { %s139_s28 = scalar_lea.sflag [#allocation6], %s704_s23  ;;  %s523_s30 = scalar_lea.hbm %s767_s14, 256 }
  0x33   : > { %p524_p3 = scmp.ne.s32.totalorder %s767_s14, %s523_s30  ;;  %s528_s24 = scalar_lea.hbm %s909_s1, 512 }
  0x34   : > { %p529_p0 = scmp.lt.u32.totalorder %s767_s14, %s909_s1  ;;  %p530_p2 = scmp.lt.u32.totalorder %s528_s24, %s523_s30 }
  0x35   : > { %p526_p8 = pnand %p524_p3, %p495_p1  ;;  %p532_p5 = scmp.lt.u32.totalorder %s523_s30, %s767_s14 }
  0x36   : > { %p531_p4 = por %p530_p2, %p529_p0 }
  0x37   : > { %p527_p10 = pneg %p526_p8 }
  0x38   : > { %p533_p7 = por %p532_p5, %p531_p4 }
  0x3a   : > { %p534_p9 = pnand %p533_p7, %p527_p10 }
  0x3c   : > { %537 = shalt.err (!%p534_p9)
}
  0x3d   : > { %s538_s25 = scalar_lea.vmem %s771_s17, 256  ;;  %s628_s7 = smov [#allocation5]  }
  0x3e   : > { %p539_p11 = scmp.ne.s32.totalorder %s771_s17, %s538_s25  ;;  %s543_s8 = sshll.u32 %s628_s7, 4  ;;  %s544_s8 = int_to_ptr.vmem [resolvable:$false] %s543_s8 }
  0x3f   : > { %s545_s16 = scalar_lea.vmem %s544_s8, 512  ;;  %p546_p6 = scmp.lt.s32.totalorder %s771_s17, %s544_s8 }
  0x40   : > { %p541_p3 = pnand %p539_p11, %p495_p1  ;;  %p547_p0 = scmp.lt.s32.totalorder %s545_s16, %s538_s25 }
  0x42   : > { %p542_p8 = pneg %p541_p3  ;;  %p548_p2 = por %p547_p0, %p546_p6 }
  0x44   : > { %p549_p4 = pnand %p548_p2, %p542_p8 }
  0x46   : > { %552 = shalt.err (!%p549_p4)
}
  0x47   : > { %440 = dma.hbm_to_vmem [thread:$0]  (!%p719_p13), %s767_s14, 256, %s771_s17, %s139_s28, %s626_s29, %s626_s29, %s627_s5  }
  0x48   : > { %161 = sbr.rel (%p758_p12) target bundleno = 156 (0x9c), region = 28  ;;  %s805_s30 = sand.u32 (!%p758_p12), 1, %s615_s10  }
  0x49   : > { %s419_s4 = sshll.u32 (!%p758_p12), %s805_s30, 4  ;;  %s164_s19 = scalar_lea.sflag (!%p758_p12), [#allocation3], %s805_s30 }
  0x4a   : > { %s167_s3 = scalar_lea.vmem (!%p758_p12), [#allocation2], %s419_s4  ;;  %p919_p6 = scmp.ne.s32.totalorder (!%p758_p12), %s914_s20, 0 }
  0x4f   : > { %598 = dma.done.wait (%p919_p6), %s164_s19, 256  }
  0x50   : > { %600 = vsyncadd (%p919_p6), %s164_s19, 4294967040  ;;  %s173_s23 = scalar_lea.sflag [#allocation6], %s805_s30  ;;  %s176_s29 = scalar_lea.vmem [#allocation5], %s419_s4 }
  0x51   : > { %602 = dma.done.wait (%p919_p6), %s173_s23, 256  }
  0x52   : > { %604 = vsyncadd (%p919_p6), %s173_s23, 4294967040  ;;  %v818_v0 = vld [vmem:[%s167_s3] sm:$0xff]  ;;  %v820_v1 = vld [vmem:[%s167_s3 + $0x8] sm:$0xff]  ;;  %vm258_vm0 = vcmask 261120   ;;  %s421_s20 = sshll.u32 %s805_s30, 2  ;;  %vm268_vm1 = vcmask 253952  }
  0x53   : > { %v208_v2 = vand.u32 2147483647, %v818_v0  ;;  %v209_v3 = vand.u32 2147483647, %v820_v1  ;;  %v824_v4 = vld [vmem:[%s176_s29] sm:$0xff]  ;;  %v826_v5 = vld [vmem:[%s176_s29 + $0x8] sm:$0xff] }
  0x54   : > { %v292_v8 = vsel %vm258_vm0, %v824_v4, 0.0  ;;  %v293_v9 = vsel %vm258_vm0, %v826_v5, 0.0  ;;  %s833_s5 = scalar_lea.vmem [#allocation7], %s421_s20  ;;  %v216_v26 = vmax.f32 %v818_v0, 0.0  ;;  %v218_v27 = vmul.f32 %v824_v4, %v818_v0  ;;  %s423_s14 = sshll.u32 %s666_s13, 6 }
  0x55   : > { %v210_v6 = vsub.f32 0.0, %v208_v2  ;;  %v211_v7 = vsub.f32 0.0, %v209_v3  ;;  %v294_v12 = vadd.f32 %v293_v9, %v292_v8  ;;  %v217_v30 = vmax.f32 %v820_v1, 0.0  ;;  %s316_s6 = sshll.u32 %s833_s5, 4  ;;  %s864_s24 = scalar_lea.hbm %s910_s2, %s423_s14  ;;  %s857_s6 = int_to_ptr.vmem [resolvable:$true] %s316_s6 }
  0x56   : > { %v219_v31 = vmul.f32 %v826_v5, %v820_v1  ;;  %v220_v35 = vsub.f32 %v216_v26, %v218_v27  ;;  %vm252_vm4 = vcmp.ge.f32.partialorder %v818_v0, 0.0  ;;  %vm253_vm5 = vcmp.ge.f32.partialorder %v820_v1, 0.0  ;;  %s303_s26 = scalar_lea.sflag [#allocation4], %s805_s30  ;;  %s553_s27 = scalar_lea.vmem %s857_s6, 64 }
  0x57   : > { %v212_v10 = vmul.f32 1.442695, %v210_v6  ;;  %v214_v11 = vmul.f32 1.442695, %v211_v7  ;;  %v295_v13 = vrot.slane %v294_v12, 4  ;;  %p554_p13 = scmp.ne.s32.totalorder %s857_s6, %s553_s27  ;;  %p920_p1 = scmp.ne.s32.totalorder %s915_s21, 0 }
  0x58   : > { %v221_v38 = vsub.f32 %v217_v30, %v219_v31  ;;  %s629_s13 = smov [#allocation7]  }
  0x59   : > { %481 = vpow2.f32 %v212_v10  ;;  %v296_v14 = vadd.f32 %v295_v13, %v294_v12  ;;  %p555_p12 = pnand %p554_p13, %p920_p1  ;;  %s557_s25 = sshll.u32 %s629_s13, 4  ;;  %s558_s25 = int_to_ptr.vmem [resolvable:$false] %s557_s25 }
  0x5a   : > { %483 = vpow2.f32 %v214_v11  ;;  %s559_s7 = scalar_lea.vmem %s558_s25, 128  ;;  %p560_p5 = scmp.lt.s32.totalorder %s857_s6, %s558_s25 }
  0x5b   : > { %v297_v15 = vrot.slane %v296_v14, 2  ;;  %p556_p10 = pneg %p555_p12  ;;  %p561_p7 = scmp.lt.s32.totalorder %s559_s7, %s553_s27 }
  0x5d   : > { %v298_v16 = vadd.f32 %v297_v15, %v296_v14  ;;  %p562_p9 = por %p561_p7, %p560_p5 }
  0x5f   : > { %v299_v17 = vrot.slane %v298_v16, 1  ;;  %p563_p11 = pnand %p562_p9, %p556_p10 }
  0x61   : > { %v300_v19 = vadd.f32 %v299_v17, %v298_v16 }
  0x63   : > { %v482_v18 = vpop.eup %481  ;;  %301 = vst.msk [vmem:[%s833_s5 + $0x3] sm:$0x1] %vm268_vm1, %v300_v19 }
  0x64   : > { %v484_v20 = vpop.eup %483  ;;  %v222_v21 = vadd.f32 1.0, %v482_v18  ;;  %v225_v23 = vmul.f32 -0.5, %v482_v18  ;;  %v228_v28 = vand.u32 2147483647, %v482_v18 }
  0x65   : > { %v231_v22 = vadd.f32 1.0, %v484_v20  ;;  %v234_v24 = vmul.f32 -0.5, %v484_v20  ;;  %v237_v32 = vand.u32 2147483647, %v484_v20 }
  0x66   : > { %485 = vlog2.f32 %v222_v21  ;;  %v226_v25 = vadd.f32 1.0, %v225_v23  ;;  %vm229_vm2 = vcmp.lt.f32.partialorder %v228_v28, 0.0004427343 }
  0x67   : > { %487 = vlog2.f32 %v231_v22  ;;  %v235_v29 = vadd.f32 1.0, %v234_v24  ;;  %vm238_vm3 = vcmp.lt.f32.partialorder %v237_v32, 0.0004427343 }
  0x68   : > { %489 = vrcp.f32 %v222_v21  ;;  %v227_v33 = vmul.f32 %v482_v18, %v226_v25 }
  0x69   : > { %491 = vrcp.f32 %v231_v22  ;;  %v236_v36 = vmul.f32 %v484_v20, %v235_v29 }
  0x70   : > { %v486_v34 = vpop.eup %485 }
  0x71   : > { %v488_v37 = vpop.eup %487  ;;  %v224_v39 = vmul.f32 0.6931472, %v486_v34 }
  0x72   : > { %v490_v40 = vpop.eup %489  ;;  %v233_v41 = vmul.f32 0.6931472, %v488_v37 }
  0x73   : > { %v492_v42 = vpop.eup %491  ;;  %v230_v43 = vsel %vm229_vm2, %v227_v33, %v224_v39  ;;  %v246_v44 = vmul.f32 %v490_v40, %v222_v21 }
  0x74   : > { %v239_v45 = vsel %vm238_vm3, %v236_v36, %v233_v41  ;;  %v240_v46 = vadd.f32 %v230_v43, %v220_v35  ;;  %v247_v47 = vmul.f32 %v492_v42, %v231_v22 }
  0x75   : > { %v241_v48 = vadd.f32 %v239_v45, %v221_v38  ;;  %v248_v49 = vsub.f32 2.0, %v246_v44 }
  0x76   : > { %v259_v50 = vsel %vm258_vm0, %v240_v46, 0.0  ;;  %v249_v51 = vsub.f32 2.0, %v247_v47 }
  0x77   : > { %v260_v52 = vsel %vm258_vm0, %v241_v48, 0.0  ;;  %v250_v53 = vmul.f32 %v490_v40, %v248_v49 }
  0x78   : > { %v261_v54 = vadd.f32 %v260_v52, %v259_v50  ;;  %v251_v55 = vmul.f32 %v492_v42, %v249_v51 }
  0x79   : > { %v254_v56 = vmul.f32 %v482_v18, %v250_v53 }
  0x7a   : > { %v262_v57 = vrot.slane %v261_v54, 4  ;;  %v255_v58 = vmul.f32 %v484_v20, %v251_v55 }
  0x7b   : > { %v256_v59 = vsel %vm252_vm4, %v250_v53, %v254_v56 }
  0x7c   : > { %v263_v60 = vadd.f32 %v262_v57, %v261_v54  ;;  %v257_v61 = vsel %vm253_vm5, %v251_v55, %v255_v58  ;;  %v270_v62 = vmul.f32 %v256_v59, %v824_v4  ;;  %v282_v63 = vsel %vm258_vm0, %v256_v59, 0.0 }
  0x7d   : > { %v271_v2 = vmul.f32 %v257_v61, %v826_v5  ;;  %v283_v3 = vsel %vm258_vm0, %v257_v61, 0.0 }
  0x7e   : > { %v264_v6 = vrot.slane %v263_v60, 2  ;;  %v272_v0 = vsel %vm258_vm0, %v270_v62, 0.0  ;;  %v284_v7 = vadd.f32 %v283_v3, %v282_v63 }
  0x7f   : > { %v273_v1 = vsel %vm258_vm0, %v271_v2, 0.0 }
  0x80   : > { %v265_v8 = vadd.f32 %v264_v6, %v263_v60  ;;  %v274_v9 = vadd.f32 %v273_v1, %v272_v0  ;;  %v285_v10 = vrot.slane %v284_v7, 4 }
  0x82   : > { %v266_v11 = vrot.slane %v265_v8, 1  ;;  %v275_v4 = vrot.slane %v274_v9, 4  ;;  %v286_v12 = vadd.f32 %v285_v10, %v284_v7 }
  0x84   : > { %v267_v13 = vadd.f32 %v266_v11, %v265_v8  ;;  %v276_v5 = vadd.f32 %v275_v4, %v274_v9  ;;  %v287_v14 = vrot.slane %v286_v12, 2 }
  0x86   : > { %269 = vst.msk [vmem:[%s833_s5] sm:$0x1] %vm268_vm1, %v267_v13  ;;  %v277_v15 = vrot.slane %v276_v5, 2  ;;  %v288_v16 = vadd.f32 %v287_v14, %v286_v12 }
  0x88   : > { %v278_v17 = vadd.f32 %v277_v15, %v276_v5  ;;  %v289_v18 = vrot.slane %v288_v16, 1 }
  0x8a   : > { %v279_v19 = vrot.slane %v278_v17, 1  ;;  %v290_v20 = vadd.f32 %v289_v18, %v288_v16 }
  0x8c   : > { %v280_v21 = vadd.f32 %v279_v19, %v278_v17  ;;  %291 = vst.msk [vmem:[%s833_s5 + $0x2] sm:$0x1] %vm268_vm1, %v290_v20 }
  0x8e   : > { %281 = vst.msk [vmem:[%s833_s5 + $0x1] sm:$0x1] %vm268_vm1, %v280_v21 }
  0x8f   : > { %566 = shalt.err (!%p563_p11)
}
  0x90   : > { %s567_s8 = scalar_lea.hbm %s864_s24, 64  ;;  %s571_s4 = scalar_lea.hbm %s910_s2, 128 }
  0x91   : > { %p568_p3 = scmp.ne.s32.totalorder %s864_s24, %s567_s8  ;;  %p572_p2 = scmp.lt.u32.totalorder %s864_s24, %s910_s2 }
  0x92   : > { %p573_p4 = scmp.lt.u32.totalorder %s571_s4, %s567_s8  ;;  %p575_p13 = scmp.lt.u32.totalorder %s567_s8, %s864_s24 }
  0x93   : > { %p569_p8 = pnand %p568_p3, %p920_p1 }
  0x94   : > { %p574_p6 = por %p573_p4, %p572_p2 }
  0x95   : > { %p570_p0 = pneg %p569_p8 }
  0x96   : > { %p576_p12 = por %p575_p13, %p574_p6 }
  0x98   : > { %p577_p10 = pnand %p576_p12, %p570_p0 }
  0x9a   : > { %580 = shalt.err (!%p577_p10)
}
  0x9b   : > { %432 = dma.vmem_to_hbm [thread:$0]  (%p920_p1), %s857_s6, 64, %s864_s24, %s303_s26  }
  0x9c PF: > { %s328_s23 = sand.u32 1, %s611_s9   ;;  %p921_p5 = scmp.ne.s32.totalorder %s916_s22, 0 }
  0x9d   : > { %p922_p7 = scmp.ge.s32.totalorder %s623_s12, 2  ;;  %s329_s29 = scalar_lea.sflag [#allocation4], %s328_s23 }
  0x9f   : > { %p442_p9 = pnand %p922_p7, %p921_p5 }
  0xa1   : > { %606 = dma.done.wait (!%p442_p9), %s329_s29, 64  }
  0xa2   : > { %608 = vsyncadd (!%p442_p9), %s329_s29, 4294967232  ;;  %p18_p11 = scmp.ge.s32.totalorder %s670_s15, 4   ;;  %s923_s9 = smov %s615_s10 }
  0xa3   : > { %s924_s10 = smov %s619_s11  ;;  %s925_s11 = smov %s682_s18 }
  0xa4   : > { %s926_s12 = smov %s670_s15  ;;  %20 = sbr.rel (!%p18_p11) target bundleno = 7 (0x7), region = 86 }
  0xab   :  { %334 = vsyncpa [#allocation3], 1 }
  0xac   :  { %336 = vsyncpa [#allocation3 + $0x1], 1 }
  0xad   :  { %337 = vsyncpa [#allocation6], 1 }
  0xae   :  { %339 = vsyncpa [#allocation6 + $0x1], 1 }
  0xaf   :  { %340 = vsyncpa [#allocation4], 1 }
  0xb0   :  { %342 = vsyncpa [#allocation4 + $0x1], 1 }

</bundles_post_ra>
